<compile_context>
chip_gen: v7x
topology: tpu7x:2x2x1
jax: 0.10.0
libtpu: 0.0.40
codegen_flags: <defaults>
</compile_context>

<pallas_src>
import jax
import jax.numpy as jnp
from jax.experimental import pallas as pl
from jax.experimental.pallas import tpu as pltpu


def _round_up(x, m):
    return ((x + m - 1) // m) * m


def _physical_vmem_bytes():
    # Trace-time hardware query; fall back to the smallest generation (v7x, 64 MiB).
    try:
        return int(pltpu.get_tpu_info().vmem_capacity_bytes)
    except Exception:
        return 64 << 20


def _choose_batch_tiling(B, tm_target=256):
    """Pick (TM, Bp) with TM | Bp.

    TM is a multiple of 8 (f32 sublane tile), preferably 16 (bf16 packs 16
    sublanes per vreg), capped at tm_target (256 rows feeds a v6e/v7x 256x256
    MXU; on v5e 128 would suffice but 256 only costs a little VMEM).  We
    always emit >= 2 grid steps so the "parallel" batch axis can shard across
    both v7x TensorCores; for B <= 8 the second tile is padding-only
    (harmless, ~0.35 us) and turns into real work as soon as B > 8.
    """
    if B <= 16:
        return 8, 16
    Bp = _round_up(B, 16)
    if Bp < 2 * tm_target:
        tm = _round_up(Bp // 2, 16)      # exactly two tiles, both TCs busy
        return tm, 2 * tm
    return tm_target, _round_up(Bp, tm_target)


def _classify_kernel(x_ref, w_ref, b_ref, o_ref):
    # f32 activations are cast to bf16 in-kernel (free under MXU/DMA slack);
    # bf16 x bf16 -> f32 accumulate on the MXU, then f32 bias add.
    x = x_ref[...].astype(jnp.bfloat16)
    acc = jnp.dot(x, w_ref[...], preferred_element_type=jnp.float32)
    o_ref[...] = acc + b_ref[...]            # bias [1, Np] broadcasts over rows


def fold_and_pad_params(mean_c, std_c, w, b):
    """One-time (parameter-load time) preprocessing of the classifier params.

    Folds the per-channel standardization into the linear layer:
        y = ((x - mean)/std) @ W + b
          = x @ (inv_std[:, None] * W) + (b - (mean * inv_std) @ W)
    then pads N to a lane-dense multiple of 128 and casts W' to bf16
    (the fold itself is done in f32 before the cast).  b' stays f32.
    """
    F, N = w.shape
    C = mean_c.shape[0]
    hw = F // C
    # NOTE: jnp.repeat(mean_c, hw) matches NCHW flatten order (channel outermost).
    mean_f = jnp.repeat(mean_c.astype(jnp.float32), hw)             # [F]
    inv_std_f = 1.0 / jnp.repeat(std_c.astype(jnp.float32), hw)     # [F]
    w32 = w.astype(jnp.float32)
    w_folded = w32 * inv_std_f[:, None]                             # [F, N]
    b_folded = b.astype(jnp.float32) - (mean_f * inv_std_f) @ w32   # [N]

    Np = _round_up(N, 128)
    w_pad = jnp.zeros((F, Np), jnp.bfloat16).at[:, :N].set(w_folded.astype(jnp.bfloat16))
    b_pad = jnp.zeros((1, Np), jnp.float32).at[:, :N].set(b_folded[None, :])
    return w_pad, b_pad


def generic_preprocessing_forward(x_nchw, w_pad, b_pad, num_classes):
    """x_nchw: [B,C,H,W] f32; w_pad: [F,Np] bf16 (folded); b_pad: [1,Np] f32."""
    B, C, H, W = x_nchw.shape
    F = C * H * W
    Np = w_pad.shape[1]

    TM, Bp = _choose_batch_tiling(B)
    grid_m = Bp // TM

    # Batch-pad only; x stays f32 (bf16 cast happens inside the kernel).
    x_pad = jnp.zeros((Bp, F), jnp.float32).at[:B].set(
        x_nchw.reshape(B, F).astype(jnp.float32))

    # VMEM budget: W + bias single-buffered (constant index), x/out double-buffered.
    w_bytes = F * Np * 2
    b_bytes = Np * 4
    x_tile_bytes = TM * F * 4
    out_tile_bytes = TM * Np * 4
    needed = w_bytes + b_bytes + 2 * (x_tile_bytes + out_tile_bytes)
    vmem_cap = int(0.75 * _physical_vmem_bytes())
    vmem_limit = min(max(32 << 20, int(needed * 1.25) + (1 << 20)), vmem_cap)

    cost = pl.CostEstimate(
        flops=2 * Bp * F * Np,
        transcendentals=0,
        bytes_accessed=Bp * F * 4 + w_bytes + b_bytes + Bp * Np * 4,
    )

    out = pl.pallas_call(
        _classify_kernel,
        out_shape=jax.ShapeDtypeStruct((Bp, Np), jnp.float32),
        grid=(grid_m,),
        in_specs=[
            pl.BlockSpec((TM, F), lambda i: (i, 0)),              # activation tile
            pl.BlockSpec((F, Np), lambda i: (0, 0),               # folded W: resident,
                         pipeline_mode=pl.Buffered(1)),           #   single-buffered
            pl.BlockSpec((1, Np), lambda i: (0, 0),               # folded bias: resident
                         pipeline_mode=pl.Buffered(1)),
        ],
        out_specs=pl.BlockSpec((TM, Np), lambda i: (i, 0)),       # lane-dense output
        compiler_params=pltpu.CompilerParams(
            dimension_semantics=("parallel",),   # batch tiles shard across TCs
            vmem_limit_bytes=vmem_limit,
        ),
        cost_estimate=cost,
    )(x_pad, w_pad, b_pad)

    return out[:B, :num_classes]


def _reference(x_nchw, mean_c, std_c, w, b):
    B, C, H, W = x_nchw.shape
    xn = (x_nchw - mean_c.reshape(1, C, 1, 1)) / std_c.reshape(1, C, 1, 1)
    return xn.reshape(B, -1) @ w + b


if __name__ == "__main__":
    key = jax.random.PRNGKey(0)
    k_x, k_w, k_b = jax.random.split(key, 3)

    B, C, H, W = 2, 4, 16, 16
    NUM_CLASSES = 10
    F = C * H * W

    x = jax.random.normal(k_x, (B, C, H, W), dtype=jnp.float32)

    # Deterministic synthetic parameters (no checkpoint).
    mean_c = jnp.array([0.485, 0.456, 0.406, 0.5], dtype=jnp.float32)
    std_c = jnp.array([0.229, 0.224, 0.225, 0.25], dtype=jnp.float32)
    w = jax.random.normal(k_w, (F, NUM_CLASSES), dtype=jnp.float32) * 0.02
    b = jax.random.normal(k_b, (NUM_CLASSES,), dtype=jnp.float32) * 0.01

    # One-time parameter preprocessing (hoisted out of the per-forward path).
    w_pad, b_pad = jax.block_until_ready(fold_and_pad_params(mean_c, std_c, w, b))

    y = generic_preprocessing_forward(x, w_pad, b_pad, NUM_CLASSES)
    y = jax.block_until_ready(y)

    y_ref = _reference(x, mean_c, std_c, w, b)
    assert y.shape == (B, NUM_CLASSES)
    # bf16 matmul operands (f32 accumulation) -> bf16-appropriate tolerance at
    # this F; scale tolerance with sqrt(F) (or keep W' in f32) if F grows large.
    assert jnp.allclose(y, y_ref, atol=2e-2, rtol=2e-2), "mismatch vs reference"

    print("KERNEL_OK")
</pallas_src>

<mosaic_0001>
module attributes {stable_mosaic.version = 11 : i64} {
  func.func @_classify_kernel(%arg0: i32, %arg1: memref<8x1024xf32, #tpu.memory_space<vmem>>, %arg2: memref<1024x128xbf16, #tpu.memory_space<vmem>>, %arg3: memref<1x128xf32, #tpu.memory_space<vmem>>, %arg4: memref<8x128xf32, #tpu.memory_space<vmem>>) attributes {dimension_semantics = [#tpu.dimension_semantics<parallel>], iteration_bounds = array<i64: 2>, scalar_prefetch = 0 : i64, scratch_operands = 0 : i64, tpu.core_type = #tpu.core_type<tc>, window_params = [{transform_indices = @transform_0, window_bounds = array<i64: 8, 1024>}, {pipeline_mode = #tpu.pipeline_mode<synchronous>, transform_indices = @transform_1, window_bounds = array<i64: 1024, 128>}, {pipeline_mode = #tpu.pipeline_mode<synchronous>, transform_indices = @transform_2, window_bounds = array<i64: 1, 128>}, {transform_indices = @transform_3, window_bounds = array<i64: 8, 128>}]} {
    %c0 = arith.constant 0 : index
    %c0_0 = arith.constant 0 : index
    %0 = vector.load %arg1[%c0, %c0_0] : memref<8x1024xf32, #tpu.memory_space<vmem>>, vector<8x1024xf32>
    %1 = arith.truncf %0 : vector<8x1024xf32> to vector<8x1024xbf16>
    %c0_1 = arith.constant 0 : index
    %c0_2 = arith.constant 0 : index
    %2 = vector.load %arg2[%c0_1, %c0_2] : memref<1024x128xbf16, #tpu.memory_space<vmem>>, vector<1024x128xbf16>
    %cst = arith.constant dense<0.000000e+00> : vector<8x128xf32>
    %3 = tpu.matmul %1, %2, %cst {dimension_numbers = #tpu.dot_dimension_numbers<[1], [0], [0], [1], [0, 0, 1, 1], [], []>} : vector<8x1024xbf16>, vector<1024x128xbf16>, vector<8x128xf32> -> vector<8x128xf32>
    %c0_3 = arith.constant 0 : index
    %c0_4 = arith.constant 0 : index
    %4 = vector.load %arg3[%c0_3, %c0_4] : memref<1x128xf32, #tpu.memory_space<vmem>>, vector<1x128xf32>
    %5 = vector.broadcast %4 : vector<1x128xf32> to vector<8x128xf32>
    %6 = arith.addf %3, %5 : vector<8x128xf32>
    %c0_5 = arith.constant 0 : index
    %c0_6 = arith.constant 0 : index
    %7 = vector.load %arg4[%c0_5, %c0_6] : memref<8x128xf32, #tpu.memory_space<vmem>>, vector<8x128xf32>
    tpu.vector_store %arg4[%c0_5, %c0_6], %6 {strides = array<i32>} : memref<8x128xf32, #tpu.memory_space<vmem>>, vector<8x128xf32>,
    return
  }
  func.func @transform_0(%arg0: i32) -> (i32, i32) {
    %c0_i32 = arith.constant 0 : i32
    %c0_i32_0 = arith.constant 0 : i32
    return %arg0, %c0_i32 : i32, i32
  }
  func.func @transform_1(%arg0: i32) -> (i32, i32) {
    %c0_i32 = arith.constant 0 : i32
    %c0_i32_0 = arith.constant 0 : i32
    %c0_i32_1 = arith.constant 0 : i32
    return %c0_i32, %c0_i32_0 : i32, i32
  }
  func.func @transform_2(%arg0: i32) -> (i32, i32) {
    %c0_i32 = arith.constant 0 : i32
    %c0_i32_0 = arith.constant 0 : i32
    %c0_i32_1 = arith.constant 0 : i32
    return %c0_i32, %c0_i32_0 : i32, i32
  }
  func.func @transform_3(%arg0: i32) -> (i32, i32) {
    %c0_i32 = arith.constant 0 : i32
    %c0_i32_0 = arith.constant 0 : i32
    return %arg0, %c0_i32 : i32, i32
  }
}

</mosaic_0001>

<bundles_post_ra>
// kernel: tpu_custom_call.1
= control target key start
LH: loop header
LB: loop body
LE: loop exit
PB: predicated region body
PF: predicated region fallthrough
CT: control target
= control target key end

     0   :  { %8 = vsyncpa [#allocation3], 0  ;;  %s1650_s0 = inlined_call_operand.hbm [shape: f32[16,1024], index: 0, kind: input, shape index: {}]   ;;  %s1651_s1 = inlined_call_operand.hbm [shape: bf16[1024,128], index: 1, kind: input, shape index: {}]   ;;  %s1652_s2 = inlined_call_operand.vmem [shape: f32[1,128], index: 2, kind: input, shape index: {}]   ;;  %s1653_s3 = inlined_call_operand.hbm [shape: f32[16,128], index: 3, kind: output, shape index: {}]  }
   0x1   :  { %10 = vsyncpa [#allocation3 + $0x1], 0 }
   0x2   :  { %11 = vsyncpa [#allocation6], 0 }
   0x3   :  { %12 = vsyncpa [#allocation4], 0 }
   0x4   :  { %14 = vsyncpa [#allocation4 + $0x1], 0  ;;  %s1440_s12 = smov 0   ;;  %s1442_s13 = smov 0  }
   0x5   :  { %s1444_s14 = smov 0   ;;  %s1446_s15 = smov 0  }
   0x6 LB: > { %s1461_s16 = sadd.s32 4294967295, %s1413_s15   ;;  %s993_s17 = sadd.s32 4294967294, %s1413_s15   ;;  %s1413_s15 = sphi %s1446_s15, %s1673_s15   ;;  %s1409_s14 = sphi %s1444_s14, %s1672_s14   ;;  %s1405_s13 = sphi %s1442_s13, %s1671_s13   ;;  %s1401_s12 = sphi %s1440_s12, %s1670_s12  }
   0x7   : > { %p40_p0 = scmp.ne.s32.totalorder %s1405_s13, %s1401_s12  ;;  %p1654_p1 = scmp.eq.s32.totalorder %s1461_s16, 0 }
   0x8   : > { %p112_p3 = scmp.eq.s32.totalorder %s993_s17, 1  ;;  %p994_p5 = scmp.ge.s32.totalorder %s1413_s15, 1 }
   0x9   : > { %p1470_p4 = por %p1654_p1, %p40_p0  ;;  %p119_p7 = scmp.lt.s32.totalorder %s1413_s15, 3 }
   0xa   : > { %p1475_p6 = por %p112_p3, %p40_p0  ;;  %s1415_s21 = smov [#allocation5]  }
   0xb   : > { %s1657_s18 = scalar_select %p1470_p4, 1, 0 }
   0xc   : > { %s1658_s19 = scalar_select %p1475_p6, 1, 0 }
   0xd   : > { %p1480_p8 = pnand %p994_p5, %p119_p7  ;;  %s131_s22 = sshll.u32 %s1415_s21, 4  ;;  %s1484_s22 = int_to_ptr.vmem [resolvable:$true] %s131_s22 }
   0xe   : > { %s1496_s24 = sadd.s32 1, %s1413_s15   ;;  %s27_s25 = sadd.s32 1, %s1409_s14 }
   0xf   : > { %s1659_s20 = scalar_select %p1480_p8, 1, 0 }
  0x10   : > { %p1170_p9 = pneg %p1480_p8  ;;  %s24_s26 = ssub.s32 %s1413_s15, %s1496_s24 }
  0x11   : > { %s1285_s29 = scalar_lea.hbm %s1651_s1, 8192 }
  0x12   : > { %p1491_p11 = pnand %p1170_p9, %p1654_p1  ;;  %p1286_p12 = scmp.ne.s32.totalorder %s1651_s1, %s1285_s29 }
  0x13   : > { %p1292_p5 = scmp.lt.u32.totalorder %s1285_s29, %s1651_s1 }
  0x14   : > { %p1287_p13 = pneg %p1491_p11 }
  0x16   : > { %p1288_p0 = pnand %p1287_p13, %p1286_p12 }
  0x18   : > { %p1289_p3 = pneg %p1288_p0 }
  0x1a   : > { %p1294_p7 = pnand %p1292_p5, %p1289_p3 }
  0x1c   : > { %1297 = shalt.err (!%p1294_p7)
}
  0x1d   : > { %s1298_s7 = scalar_lea.vmem %s1484_s22, 8192  ;;  %p1306_p2 = scmp.lt.s32.totalorder %s1484_s22, %s1484_s22 }
  0x1e   : > { %p1299_p9 = scmp.ne.s32.totalorder %s1484_s22, %s1298_s7  ;;  %p1307_p6 = scmp.lt.s32.totalorder %s1298_s7, %s1298_s7 }
  0x20   : > { %p1301_p10 = pnand %p1299_p9, %p1287_p13  ;;  %p1308_p4 = por %p1307_p6, %p1306_p2 }
  0x22   : > { %p1302_p1 = pneg %p1301_p10 }
  0x24   : > { %p1309_p8 = pnand %p1308_p4, %p1302_p1 }
  0x26   : > { %1312 = shalt.err (!%p1309_p8)
}
  0x27   : > { %s1416_s8 = smov 64   ;;  %s1417_s9 = smov 4  }
  0x28   : > { %1173 = dma.hbm_to_vmem [thread:$0]  (!%p1491_p11), %s1651_s1, 8192, %s1484_s22, [#allocation6], %s1416_s8, %s1416_s8, %s1417_s9  }
  0x29   : > { %p25_p2 = scmp.eq.s32.totalorder %s24_s26, 0  ;;  %p34_p1 = scmp.ne.s32.totalorder %s1409_s14, %s1405_s13 }
  0x2a   : > { %p35_p4 = scmp.eq.s32.totalorder %s1413_s15, 0  ;;  %p1183_p6 = scmp.lt.s32.totalorder %s1413_s15, 2 }
  0x2b   : > { %s1527_s17 = scalar_select %p25_p2, %s1409_s14, %s27_s25  }
  0x2c   : > { %p36_p8 = por %p35_p4, %p34_p1  ;;  %p1661_p10 = scmp.eq.s32.totalorder %s1461_s16, 1 }
  0x2d   : > { %s148_s27 = sand.u32 1, %s1409_s14   ;;  %s1073_s28 = sshll.u32 %s1413_s15, 10 }
  0x2e   : > { %p1531_p12 = por %p1661_p10, %p34_p1  ;;  %s997_s29 = sshll.u32 %s148_s27, 6 }
  0x2f   : > { %s1540_s4 = scalar_lea.hbm %s1650_s0, %s1073_s28  ;;  %s152_s22 = scalar_lea.vmem [#allocation2], %s997_s29 }
  0x30   : > { %s160_s25 = sshll.u32 %s152_s22, 4  ;;  %p1542_p11 = pnand %p1183_p6, %p36_p8  ;;  %s1546_s25 = int_to_ptr.vmem [resolvable:$true] %s160_s25 }
  0x31   : > { %s149_s5 = scalar_lea.sflag [#allocation3], %s148_s27  ;;  %s1313_s6 = scalar_lea.hbm %s1540_s4, 1024 }
  0x32   : > { %p1314_p13 = scmp.ne.s32.totalorder %s1540_s4, %s1313_s6  ;;  %p1315_p0 = pneg %p1542_p11 }
  0x33   : > { %s1318_s9 = scalar_lea.hbm %s1650_s0, 2048  ;;  %p1319_p7 = scmp.lt.u32.totalorder %s1540_s4, %s1650_s0 }
  0x34   : > { %p1316_p3 = pnand %p1315_p0, %p1314_p13  ;;  %p1320_p9 = scmp.lt.u32.totalorder %s1318_s9, %s1313_s6 }
  0x35   : > { %p1322_p1 = scmp.lt.u32.totalorder %s1313_s6, %s1540_s4 }
  0x36   : > { %p1317_p5 = pneg %p1316_p3  ;;  %p1321_p2 = por %p1320_p9, %p1319_p7 }
  0x38   : > { %p1323_p4 = por %p1322_p1, %p1321_p2 }
  0x3a   : > { %p1324_p6 = pnand %p1323_p4, %p1317_p5 }
  0x3c   : > { %1327 = shalt.err (!%p1324_p6)
}
  0x3d   : > { %s1328_s27 = scalar_lea.vmem %s1546_s25, 1024  ;;  %s1418_s28 = smov [#allocation2]  }
  0x3e   : > { %p1329_p8 = scmp.ne.s32.totalorder %s1546_s25, %s1328_s27  ;;  %s1333_s29 = sshll.u32 %s1418_s28, 4  ;;  %s1334_s29 = int_to_ptr.vmem [resolvable:$false] %s1333_s29 }
  0x3f   : > { %s1335_s23 = scalar_lea.vmem %s1334_s29, 2048  ;;  %p1336_p3 = scmp.lt.s32.totalorder %s1546_s25, %s1334_s29 }
  0x40   : > { %p1331_p10 = pnand %p1329_p8, %p1315_p0  ;;  %p1337_p7 = scmp.lt.s32.totalorder %s1335_s23, %s1328_s27 }
  0x42   : > { %p1332_p13 = pneg %p1331_p10  ;;  %p1338_p9 = por %p1337_p7, %p1336_p3 }
  0x44   : > { %p1339_p2 = pnand %p1338_p9, %p1332_p13 }
  0x46   : > { %1342 = shalt.err (!%p1339_p2)
}
  0x47   : > { %1177 = dma.hbm_to_vmem [thread:$0]  (!%p1542_p11), %s1540_s4, 1024, %s1546_s25, %s149_s5  }
  0x48   : > { %p1664_p5 = scmp.ne.s32.totalorder %s1659_s20, 0 }
  0x49   : > { %s1576_s30 = sand.u32 (!%p1664_p5), 1, %s1405_s13   ;;  %p1665_p0 = scmp.ne.s32.totalorder (!%p1664_p5), %s1657_s18, 0 }
  0x4a   : > { %169 = sbr.rel (%p1664_p5) target bundleno = 384 (0x180), region = 32  ;;  %s1001_s22 = sshll.u32 (!%p1664_p5), %s1576_s30, 6 }
  0x4b   : > { %s172_s6 = scalar_lea.sflag (!%p1664_p5), [#allocation3], %s1576_s30  ;;  %s1580_s7 = scalar_lea.vmem (!%p1664_p5), [#allocation2], %s1001_s22 }
  0x51   : > { %1388 = dma.done.wait (%p1665_p0), %s172_s6, 1024  }
  0x52   : > { %1390 = vsyncadd (%p1665_p0), %s172_s6, 4294966272  ;;  %p1666_p11 = scmp.eq.s32.totalorder %s1461_s16, 0 }
  0x54   : > { %1392 = dma.done.wait (%p1666_p11), [#allocation6], 8192   ;;  %p1667_p1 = pmov %p1666_p11 }
  0x55   : > { %v1221_v0 = vld [vmem:[#allocation5 + $0x40] sm:$0xff]   ;;  %v1225_v4 = vld [vmem:[#allocation5 + $0x48] sm:$0xff]   ;;  %v1229_v8 = vld [vmem:[#allocation5 + $0x50] sm:$0xff]   ;;  %s1003_s4 = sshll.u32 %s1576_s30, 3  ;;  %s1070_s25 = sshll.u32 %s1461_s16, 7 }
  0x56   : > { %1394 = vsyncadd (%p1667_p1), [#allocation6], 4294959104  ;;  %v1222_v1 = vld [vmem:[#allocation5 + $0xc0] sm:$0xff]   ;;  %1074 = vmatprep.subr.bf16.mxu0 %v1221_v0  ;;  %v1226_v5 = vld [vmem:[#allocation5 + $0xc8] sm:$0xff]   ;;  %s201_s26 = scalar_lea.vmem [#allocation7], %s1003_s4  ;;  %s1606_s10 = scalar_lea.hbm %s1653_s3, %s1070_s25 }
  0x57   : > { %v1223_v2 = vld [vmem:[#allocation5] sm:$0xff]   ;;  %1096 = vmatprep.subr.bf16.mxu1 %v1222_v1  ;;  %v1227_v6 = vld [vmem:[#allocation5 + $0x8] sm:$0xff]   ;;  %v1230_v9 = vld [vmem:[#allocation5 + $0xd0] sm:$0xff]   ;;  %s913_s5 = sshll.u32 %s201_s26, 4  ;;  %s900_s11 = scalar_lea.sflag [#allocation4], %s1576_s30  ;;  %s1608_s5 = int_to_ptr.vmem [resolvable:$true] %s913_s5 }
  0x58   : > { %v1224_v3 = vld [vmem:[#allocation5 + $0x80] sm:$0xff]   ;;  %1075 = vmatpush3.bf16.msra.mxu0 %v1223_v2  ;;  %v1228_v7 = vld [vmem:[#allocation5 + $0x88] sm:$0xff]   ;;  %v1231_v10 = vld [vmem:[#allocation5 + $0x10] sm:$0xff]   ;;  %s1343_s27 = scalar_lea.vmem %s1608_s5, 128  ;;  %s1419_s16 = smov [#allocation7]  }
  0x59   : > { %1097 = vmatpush3.bf16.msra.mxu1 %v1224_v3  ;;  %1076 = vmatprep.subr.bf16.mxu0 %v1225_v4  ;;  %v1232_v11 = vld [vmem:[#allocation5 + $0x90] sm:$0xff]   ;;  %v1233_v12 = vld [vmem:[#allocation5 + $0x58] sm:$0xff]   ;;  %v1237_v16 = vld [vmem:[#allocation5 + $0x60] sm:$0xff]   ;;  %p1344_p4 = scmp.ne.s32.totalorder %s1608_s5, %s1343_s27  ;;  %s1347_s28 = sshll.u32 %s1419_s16, 4  ;;  %s1348_s28 = int_to_ptr.vmem [resolvable:$false] %s1347_s28 }
  0x5a   : > { %1098 = vmatprep.subr.bf16.mxu1 %v1226_v5  ;;  %v1234_v13 = vld [vmem:[#allocation5 + $0xd8] sm:$0xff]   ;;  %v1238_v17 = vld [vmem:[#allocation5 + $0xe0] sm:$0xff]   ;;  %v1241_v20 = vld [vmem:[#allocation5 + $0x68] sm:$0xff]   ;;  %s1349_s29 = scalar_lea.vmem %s1348_s28, 256  ;;  %p1350_p10 = scmp.lt.s32.totalorder %s1608_s5, %s1348_s28 }
  0x5b   : > { %v1235_v14 = vld [vmem:[#allocation5 + $0x18] sm:$0xff]   ;;  %v1239_v18 = vld [vmem:[#allocation5 + $0x20] sm:$0xff]   ;;  %v1242_v21 = vld [vmem:[#allocation5 + $0xe8] sm:$0xff]   ;;  %p1345_p6 = pnand %p1344_p4, %p1531_p12  ;;  %p1351_p13 = scmp.lt.s32.totalorder %s1349_s29, %s1343_s27 }
  0x5c   : > { %1077 = vmatpush3.bf16.msra.mxu0 %v1227_v6  ;;  %v1236_v15 = vld [vmem:[#allocation5 + $0x98] sm:$0xff]   ;;  %v1240_v19 = vld [vmem:[#allocation5 + $0xa0] sm:$0xff]   ;;  %v1243_v22 = vld [vmem:[#allocation5 + $0x28] sm:$0xff]  }
  0x5d   : > { %1099 = vmatpush3.bf16.msra.mxu1 %v1228_v7  ;;  %1078 = vmatprep.subr.bf16.mxu0 %v1229_v8  ;;  %v1244_v23 = vld [vmem:[#allocation5 + $0xa8] sm:$0xff]   ;;  %v1245_v24 = vld [vmem:[#allocation5 + $0x70] sm:$0xff]   ;;  %v1249_v28 = vld [vmem:[#allocation5 + $0x78] sm:$0xff]   ;;  %p1346_p8 = pneg %p1345_p6  ;;  %p1352_p3 = por %p1351_p13, %p1350_p10 }
  0x5e   : > { %1100 = vmatprep.subr.bf16.mxu1 %v1230_v9  ;;  %v1246_v25 = vld [vmem:[#allocation5 + $0xf0] sm:$0xff]   ;;  %v1250_v29 = vld [vmem:[#allocation5 + $0xf8] sm:$0xff]   ;;  %v204_v32 = vld [vmem:[%s1580_s7 + $0x8] sm:$0xff] }
  0x5f   : > { %v1247_v26 = vld [vmem:[#allocation5 + $0x30] sm:$0xff]   ;;  %v1251_v30 = vld [vmem:[#allocation5 + $0x38] sm:$0xff]   ;;  %v203_v34 = vld [vmem:[%s1580_s7] sm:$0xff]  ;;  %v212_v35 = vpack.c.bf16 %v204_v32, %v204_v32  ;;  %p1353_p7 = pnand %p1352_p3, %p1346_p8 }
  0x60   : > { %1079 = vmatpush3.bf16.msra.mxu0 %v1231_v10  ;;  %v1248_v27 = vld [vmem:[#allocation5 + $0xb0] sm:$0xff]   ;;  %v1252_v31 = vld [vmem:[#allocation5 + $0xb8] sm:$0xff]   ;;  %v211_v37 = vpack.c.bf16 %v203_v34, %v203_v34  ;;  %v1253_v40 = vld [vmem:[#allocation5 + $0x140] sm:$0xff]  }
  0x61   : > { %1101 = vmatpush3.bf16.msra.mxu1 %v1232_v11  ;;  %1080 = vmatprep.subr.bf16.mxu0 %v1233_v12  ;;  %v206_v33 = vld [vmem:[%s1580_s7 + $0x18] sm:$0xff]  ;;  %v205_v38 = vld [vmem:[%s1580_s7 + $0x10] sm:$0xff]  ;;  %v1254_v41 = vld [vmem:[#allocation5 + $0x1c0] sm:$0xff]  }
  0x62   : > { %1102 = vmatprep.subr.bf16.mxu1 %v1234_v13  ;;  %v214_v36 = vpack.c.bf16 %v206_v33, %v206_v33  ;;  %v213_v39 = vpack.c.bf16 %v205_v38, %v205_v38  ;;  %770 = vmatprep.mubr.bf16.mxu0 %v212_v35  ;;  %v1255_v42 = vld [vmem:[#allocation5 + $0x100] sm:$0xff]   ;;  %v1257_v44 = vld [vmem:[#allocation5 + $0x148] sm:$0xff]   ;;  %v1261_v48 = vld [vmem:[#allocation5 + $0x150] sm:$0xff]  }
  0x63   : > { %v1256_v43 = vld [vmem:[#allocation5 + $0x180] sm:$0xff]   ;;  %v1258_v45 = vld [vmem:[#allocation5 + $0x1c8] sm:$0xff]   ;;  %v1262_v49 = vld [vmem:[#allocation5 + $0x1d0] sm:$0xff]  }
  0x64   : > { %1081 = vmatpush3.bf16.msra.mxu0 %v1235_v14  ;;  %810 = vmatprep.mubr.bf16.mxu1 %v214_v36  ;;  %v1259_v46 = vld [vmem:[#allocation5 + $0x108] sm:$0xff]   ;;  %v1263_v50 = vld [vmem:[#allocation5 + $0x110] sm:$0xff]   ;;  %v1265_v52 = vld [vmem:[#allocation5 + $0x158] sm:$0xff]  }
  0x65   : > { %1103 = vmatpush3.bf16.msra.mxu1 %v1236_v15  ;;  %1082 = vmatprep.subr.bf16.mxu0 %v1237_v16  ;;  %v1260_v47 = vld [vmem:[#allocation5 + $0x188] sm:$0xff]   ;;  %v1264_v51 = vld [vmem:[#allocation5 + $0x190] sm:$0xff]   ;;  %v1266_v53 = vld [vmem:[#allocation5 + $0x1d8] sm:$0xff]  }
  0x66   : > { %1104 = vmatprep.subr.bf16.mxu1 %v1238_v17  ;;  %v1267_v54 = vld [vmem:[#allocation5 + $0x118] sm:$0xff]   ;;  %v1269_v56 = vld [vmem:[#allocation5 + $0x160] sm:$0xff]   ;;  %v1273_v60 = vld [vmem:[#allocation5 + $0x168] sm:$0xff]  }
  0x67   : > { %v1268_v55 = vld [vmem:[#allocation5 + $0x198] sm:$0xff]   ;;  %v1270_v57 = vld [vmem:[#allocation5 + $0x1e0] sm:$0xff]   ;;  %v1274_v61 = vld [vmem:[#allocation5 + $0x1e8] sm:$0xff]  }
  0x68   : > { %1083 = vmatpush3.bf16.msra.mxu0 %v1239_v18  ;;  %v1271_v58 = vld [vmem:[#allocation5 + $0x120] sm:$0xff]   ;;  %v1275_v62 = vld [vmem:[#allocation5 + $0x128] sm:$0xff]   ;;  %v1277_v0 = vld [vmem:[#allocation5 + $0x170] sm:$0xff]  }
  0x69   : > { %1105 = vmatpush3.bf16.msra.mxu1 %v1240_v19  ;;  %1084 = vmatprep.subr.bf16.mxu0 %v1241_v20  ;;  %v1272_v59 = vld [vmem:[#allocation5 + $0x1a0] sm:$0xff]   ;;  %v1276_v63 = vld [vmem:[#allocation5 + $0x1a8] sm:$0xff]   ;;  %v1278_v1 = vld [vmem:[#allocation5 + $0x1f0] sm:$0xff]  }
  0x6a   : > { %1106 = vmatprep.subr.bf16.mxu1 %v1242_v21  ;;  %v1279_v2 = vld [vmem:[#allocation5 + $0x130] sm:$0xff]   ;;  %v1281_v4 = vld [vmem:[#allocation5 + $0x178] sm:$0xff]   ;;  %v208_v8 = vld [vmem:[%s1580_s7 + $0x28] sm:$0xff] }
  0x6b   : > { %v1280_v3 = vld [vmem:[#allocation5 + $0x1b0] sm:$0xff]   ;;  %v1282_v5 = vld [vmem:[#allocation5 + $0x1f8] sm:$0xff]   ;;  %v216_v10 = vpack.c.bf16 %v208_v8, %v208_v8  ;;  %v207_v12 = vld [vmem:[%s1580_s7 + $0x20] sm:$0xff] }
  0x6c   : > { %1085 = vmatpush3.bf16.msra.mxu0 %v1243_v22  ;;  %v1283_v6 = vld [vmem:[#allocation5 + $0x138] sm:$0xff]   ;;  %v209_v13 = vld [vmem:[%s1580_s7 + $0x30] sm:$0xff]  ;;  %v215_v14 = vpack.c.bf16 %v207_v12, %v207_v12  ;;  %v1004_v18 = vld [vmem:[%s1652_s2] ss:$0 sm:$0xff] }
  0x6d   : > { %1107 = vmatpush3.bf16.msra.mxu1 %v1244_v23  ;;  %1086 = vmatprep.subr.bf16.mxu0 %v1245_v24  ;;  %v1284_v7 = vld [vmem:[#allocation5 + $0x1b8] sm:$0xff]   ;;  %v217_v15 = vpack.c.bf16 %v209_v13, %v209_v13 }
  0x6e   : > { %1108 = vmatprep.subr.bf16.mxu1 %v1246_v25  ;;  %v210_v9 = vld [vmem:[%s1580_s7 + $0x38] sm:$0xff] }
  0x6f   : > { %v218_v11 = vpack.c.bf16 %v210_v9, %v210_v9 }
  0x70   : > { %1087 = vmatpush3.bf16.msra.mxu0 %v1247_v26 }
  0x71   : > { %1109 = vmatpush3.bf16.msra.mxu1 %v1248_v27  ;;  %1088 = vmatprep.subr.bf16.mxu0 %v1249_v28 }
  0x72   : > { %1110 = vmatprep.subr.bf16.mxu1 %v1250_v29 }
  0x74   : > { %1089 = vmatpush3.bf16.msra.mxu0 %v1251_v30 }
  0x75   : > { %1111 = vmatpush3.bf16.msra.mxu1 %v1252_v31  ;;  %1118 = vmatprep.subr.bf16.mxu0 %v1253_v40 }
  0x76   : > { %1140 = vmatprep.subr.bf16.mxu1 %v1254_v41 }
  0x77   : > { %771 = vmatmul.mubr.bf16.vlgmr.msra.gmra.mrb[0].mxu0 %v211_v37 }
  0x78   : > { %811 = vmatmul.mubr.bf16.vlgmr.msra.gmra.mrb[0].mxu1 %v213_v39  ;;  %1119 = vmatpush3.bf16.msra.mxu0 %v1255_v42 }
  0x79   : > { %1141 = vmatpush3.bf16.msra.mxu1 %v1256_v43  ;;  %1120 = vmatprep.subr.bf16.mxu0 %v1257_v44 }
  0x7a   : > { %1142 = vmatprep.subr.bf16.mxu1 %v1258_v45  ;;  %850 = vmatprep.mubr.bf16.mxu0 %v216_v10 }
  0x7b   : > { %890 = vmatprep.mubr.bf16.mxu1 %v218_v11 }
  0x7c   : > { %1121 = vmatpush3.bf16.msra.mxu0 %v1259_v46 }
  0x7d   : > { %1143 = vmatpush3.bf16.msra.mxu1 %v1260_v47  ;;  %1122 = vmatprep.subr.bf16.mxu0 %v1261_v48 }
  0x7e   : > { %1144 = vmatprep.subr.bf16.mxu1 %v1262_v49 }
  0x80   : > { %1123 = vmatpush3.bf16.msra.mxu0 %v1263_v50 }
  0x81   : > { %1145 = vmatpush3.bf16.msra.mxu1 %v1264_v51  ;;  %1124 = vmatprep.subr.bf16.mxu0 %v1265_v52 }
  0x82   : > { %1146 = vmatprep.subr.bf16.mxu1 %v1266_v53 }
  0x84   : > { %1125 = vmatpush3.bf16.msra.mxu0 %v1267_v54 }
  0x85   : > { %1147 = vmatpush3.bf16.msra.mxu1 %v1268_v55  ;;  %1126 = vmatprep.subr.bf16.mxu0 %v1269_v56 }
  0x86   : > { %1148 = vmatprep.subr.bf16.mxu1 %v1270_v57 }
  0x88   : > { %1127 = vmatpush3.bf16.msra.mxu0 %v1271_v58 }
  0x89   : > { %1149 = vmatpush3.bf16.msra.mxu1 %v1272_v59  ;;  %1128 = vmatprep.subr.bf16.mxu0 %v1273_v60 }
  0x8a   : > { %1150 = vmatprep.subr.bf16.mxu1 %v1274_v61 }
  0x8c   : > { %1129 = vmatpush3.bf16.msra.mxu0 %v1275_v62 }
  0x8d   : > { %1151 = vmatpush3.bf16.msra.mxu1 %v1276_v63  ;;  %1130 = vmatprep.subr.bf16.mxu0 %v1277_v0 }
  0x8e   : > { %1152 = vmatprep.subr.bf16.mxu1 %v1278_v1 }
  0x90   : > { %1131 = vmatpush3.bf16.msra.mxu0 %v1279_v2 }
  0x91   : > { %1153 = vmatpush3.bf16.msra.mxu1 %v1280_v3  ;;  %1132 = vmatprep.subr.bf16.mxu0 %v1281_v4 }
  0x92   : > { %1154 = vmatprep.subr.bf16.mxu1 %v1282_v5 }
  0x94   : > { %1133 = vmatpush3.bf16.msra.mxu0 %v1283_v6 }
  0x95   : > { %1155 = vmatpush3.bf16.msra.mxu1 %v1284_v7 }
  0x97   : > { %851 = vmatmul.mubr.bf16.vlgmr.msra.gmra.mrb[4].mxu0 %v215_v14 }
  0x98   : > { %891 = vmatmul.mubr.bf16.vlgmr.msra.gmra.mrb[4].mxu1 %v217_v15 }
 0x14a   : > { %v1090_v16 = vpop.f32.mrb[0].mxu0 }
 0x14b   : > { %v1112_v17 = vpop.f32.mrb[0].mxu1  ;;  %v1091_v19 = vpop.f32.mrb[1].mxu0 }
 0x14c   : > { %v1113_v20 = vpop.f32.mrb[1].mxu1  ;;  %v1092_v21 = vadd.f32 %v1091_v19, %v1090_v16  ;;  %v1093_v23 = vpop.f32.mrb[2].mxu0 }
 0x14d   : > { %v1114_v22 = vadd.f32 %v1113_v20, %v1112_v17  ;;  %v1115_v24 = vpop.f32.mrb[2].mxu1  ;;  %v1094_v25 = vpop.f32.mrb[3].mxu0 }
 0x14e   : > { %v1116_v26 = vpop.f32.mrb[3].mxu1  ;;  %v773_v27 = vadd.f32 %v1092_v21, %v1004_v18 }
 0x150   : > { %v813_v28 = vadd.f32 %v1114_v22, %v773_v27 }
 0x16a   : > { %v1134_v29 = vpop.f32.mrb[4].mxu0 }
 0x16b   : > { %v1156_v30 = vpop.f32.mrb[4].mxu1  ;;  %v1135_v31 = vpop.f32.mrb[5].mxu0 }
 0x16c   : > { %v1136_v32 = vadd.f32 %v1135_v31, %v1134_v29  ;;  %v1157_v33 = vpop.f32.mrb[5].mxu1  ;;  %v1137_v34 = vpop.f32.mrb[6].mxu0 }
 0x16d   : > { %v1158_v35 = vadd.f32 %v1157_v33, %v1156_v30  ;;  %v1159_v36 = vpop.f32.mrb[6].mxu1  ;;  %v1138_v37 = vpop.f32.mrb[7].mxu0 }
 0x16e   : > { %v853_v38 = vadd.f32 %v1136_v32, %v813_v28  ;;  %v1160_v39 = vpop.f32.mrb[7].mxu1 }
 0x170   : > { %v893_v40 = vadd.f32 %v1158_v35, %v853_v38 }
 0x172   : > { %898 = vst [vmem:[%s201_s26] sm:$0xff] %v893_v40 }
 0x173   : > { %1356 = shalt.err (!%p1353_p7)
}
 0x174   : > { %s1357_s23 = scalar_lea.hbm %s1606_s10, 128  ;;  %s1361_s6 = scalar_lea.hbm %s1653_s3, 256 }
 0x175   : > { %p1358_p9 = scmp.ne.s32.totalorder %s1606_s10, %s1357_s23  ;;  %p1362_p0 = scmp.lt.u32.totalorder %s1606_s10, %s1653_s3 }
 0x176   : > { %p1363_p11 = scmp.lt.u32.totalorder %s1361_s6, %s1357_s23  ;;  %p1365_p4 = scmp.lt.u32.totalorder %s1357_s23, %s1606_s10 }
 0x177   : > { %p1359_p2 = pnand %p1358_p9, %p1531_p12 }
 0x178   : > { %p1364_p1 = por %p1363_p11, %p1362_p0 }
 0x179   : > { %p1360_p5 = pneg %p1359_p2 }
 0x17a   : > { %p1366_p6 = por %p1365_p4, %p1364_p1 }
 0x17c   : > { %p1367_p8 = pnand %p1366_p6, %p1360_p5 }
 0x17e   : > { %1370 = shalt.err (!%p1367_p8)
}
 0x17f   : > { %1168 = dma.vmem_to_hbm [thread:$0]  (%p1531_p12), %s1608_s5, 128, %s1606_s10, %s900_s11  }
 0x180 PF: > { %s925_s20 = sand.u32 1, %s1401_s12   ;;  %p1668_p10 = scmp.ne.s32.totalorder %s1658_s19, 0 }
 0x181   : > { %p1669_p13 = scmp.ge.s32.totalorder %s1413_s15, 2  ;;  %s926_s4 = scalar_lea.sflag [#allocation4], %s925_s20 }
 0x183   : > { %p1179_p3 = pnand %p1669_p13, %p1668_p10 }
 0x185   : > { %1396 = dma.done.wait (!%p1179_p3), %s926_s4, 128  }
 0x186   : > { %1398 = vsyncadd (!%p1179_p3), %s926_s4, 4294967168  ;;  %p17_p7 = scmp.ge.s32.totalorder %s1496_s24, 4   ;;  %s1670_s12 = smov %s1405_s13 }
 0x187   : > { %s1671_s13 = smov %s1409_s14  ;;  %s1672_s14 = smov %s1527_s17 }
 0x188   : > { %s1673_s15 = smov %s1496_s24  ;;  %19 = sbr.rel (!%p17_p7) target bundleno = 6 (0x6), region = 81 }
 0x18f   :  { %931 = vsyncpa [#allocation3], 1 }
 0x190   :  { %933 = vsyncpa [#allocation3 + $0x1], 1 }
 0x191   :  { %934 = vsyncpa [#allocation6], 1 }
 0x192   :  { %935 = vsyncpa [#allocation4], 1 }
 0x193   :  { %937 = vsyncpa [#allocation4 + $0x1], 1 }

</bundles_post_ra>
